<compile_context>
chip_gen: v6e
topology: v6e:2x2x1
jax: 0.10.0
libtpu: 0.0.40
codegen_flags: <defaults>
</compile_context>

<pallas_src>
import functools
import math

import jax
import jax.numpy as jnp
from jax import lax
from jax.experimental import pallas as pl
from jax.experimental.pallas import tpu as pltpu

LANES = 128
SUBLANES = 8


def _pow(x, gamma):
    if float(gamma).is_integer():
        return lax.integer_pow(x, int(gamma))
    # Matches torch.pow: negative base with non-integer exponent -> NaN.
    return jnp.power(x, jnp.float32(gamma))


def _loss_core(p, t_is_zero, gamma):
    # Un-scaled focal loss; the factor 15 is folded into the epilogue.
    wrong = -(p * p)
    right = _pow(p - 1.0, gamma) * jnp.log(p)
    return jnp.where(t_is_zero, wrong, right)


def _focal_kernel(p_ref, t_ref, out_ref, *, gamma, tile_rows, rows_valid,
                  num_blocks, steps, block_shift, needs_tail_mask,
                  needs_overlap_mask):
    c = pl.program_id(0)            # core axis ("parallel"; size 1 off-v7x)
    i = pl.program_id(1)            # reduction axis ("arbitrary")

    # Zero this core's resident (8, 128) accumulator at the start of its pass.
    @pl.when(i == 0)
    def _():
        out_ref[...] = jnp.zeros_like(out_ref)

    p = p_ref[...].astype(jnp.float32)
    t_is_zero = t_ref[...] == 0          # native-dtype compare (no upcast)
    loss = _loss_core(p, t_is_zero, gamma)

    def _accumulate(x):
        # (tile_rows,128) -> (tile_rows/8, 8, 128), reduce leading axis: pure
        # VPU adds into the resident tile, hidden under the input DMA.
        out_ref[...] += x.reshape(tile_rows // SUBLANES, SUBLANES, LANES).sum(axis=0)

    if not (needs_tail_mask or needs_overlap_mask):
        # Fast path: no block in the whole grid ever needs masking.
        _accumulate(loss)
        return

    # Scalar edge-block predicate (cheap sreg ops only).
    gb = c * block_shift + i                     # global block index
    edge = None
    if needs_tail_mask:
        edge = gb == num_blocks - 1
    if needs_overlap_mask:
        ov = jnp.logical_and(c == 1, i == 0)
        edge = ov if edge is None else jnp.logical_or(edge, ov)

    @pl.when(jnp.logical_not(edge))
    def _():
        _accumulate(loss)

    @pl.when(edge)
    def _():
        # Row-granular mask only (lane tail is handled in XLA, so only whole
        # stale / non-owned rows need zeroing). NaNs in the masked-away rows
        # do not propagate through jnp.where.
        row0 = gb * tile_rows
        r = lax.broadcasted_iota(jnp.int32, (tile_rows, LANES), 0)
        grow = row0 + r
        lo = c * (steps * tile_rows)             # first row owned by core c
        keep = jnp.logical_and(grow >= lo, grow < rows_valid)
        _accumulate(jnp.where(keep, loss, 0.0))


def _min_rows(dtype):
    # Minimum sublane multiple for a packed dtype's native tile.
    return {1: 32, 2: 16, 4: 8}.get(jnp.dtype(dtype).itemsize, 8)


def _device_kind():
    try:
        return jax.devices()[0].device_kind.lower()
    except Exception:
        return ""


def focal_log_loss(y_predict, y_true, gamma=2, *, max_tile_rows=None):
    """Pallas TPU implementation of FocalLogLoss.forward. Returns a scalar f32."""
    assert y_predict.shape == y_true.shape
    n = math.prod(y_predict.shape)
    assert n > 0

    p = y_predict.reshape(-1)
    t = y_true.reshape(-1)

    # Keep narrow dtypes on the wire (HBM traffic is the roofline); upcast p
    # to f32 inside the kernel, compare t in its native dtype.
    if (not jnp.issubdtype(p.dtype, jnp.floating)) or jnp.dtype(p.dtype).itemsize > 4:
        p = p.astype(jnp.float32)
    if t.dtype == jnp.bool_:
        t = t.astype(jnp.int8)
    elif jnp.dtype(t.dtype).itemsize > 4:
        t = t.astype(jnp.float32)

    kind = _device_kind()
    if max_tile_rows is None:
        max_tile_rows = 8192 if "v7" in kind else 4096

    # ---- split off the ragged lane tail (XLA, no full-array copy) ----------
    rem = n % LANES
    n_main = n - rem
    rows = n_main // LANES
    if rows < SUBLANES:                 # tiny input: do it all in XLA
        n_main, rows, rem = 0, 0, n

    tail_sum = jnp.float32(0.0)
    if rem:
        p_tail = p[n_main:].astype(jnp.float32)
        t_tail = t[n_main:]
        tail_sum = jnp.sum(_loss_core(p_tail, t_tail == 0, gamma))

    if rows == 0:
        return (-15.0 * tail_sum / jnp.float32(n)).astype(jnp.float32)

    p2d = p[:n_main].reshape(rows, LANES)
    t2d = t[:n_main].reshape(rows, LANES)

    # ---- tiling -------------------------------------------------------------
    req = max(_min_rows(p2d.dtype), _min_rows(t2d.dtype))
    if rows < req:
        # Tiny input with a packed dtype: widen (negligible) so (8,128) tiles work.
        p2d = p2d.astype(jnp.float32)
        t2d = t2d.astype(jnp.float32)
        req = SUBLANES
    tile_rows = min(max_tile_rows, (rows // req) * req)
    num_blocks = pl.cdiv(rows, tile_rows)       # last block may be partial

    # 2-core split only where a second TensorCore exists (v7x); single-TC
    # chips run a plain serial grid with no duplicate-block traffic.
    ncores = 2 if ("v7" in kind and num_blocks >= 2) else 1
    steps = pl.cdiv(num_blocks, ncores)
    block_shift = num_blocks - steps            # core c starts at block c*shift
    needs_tail_mask = (rows % tile_rows) != 0
    needs_overlap_mask = (ncores == 2) and (block_shift < steps)  # odd #blocks

    kernel = functools.partial(
        _focal_kernel, gamma=gamma, tile_rows=tile_rows, rows_valid=rows,
        num_blocks=num_blocks, steps=steps, block_shift=block_shift,
        needs_tail_mask=needs_tail_mask, needs_overlap_mask=needs_overlap_mask)

    in_map = lambda c, i: (c * block_shift + i, 0)
    bytes_accessed = (rows * LANES * (p2d.dtype.itemsize + t2d.dtype.itemsize)
                      + ncores * SUBLANES * LANES * 4)

    partials = pl.pallas_call(
        kernel,
        out_shape=jax.ShapeDtypeStruct((ncores * SUBLANES, LANES), jnp.float32),
        grid_spec=pltpu.PrefetchScalarGridSpec(
            num_scalar_prefetch=0,
            grid=(ncores, steps),
            in_specs=[
                pl.BlockSpec((tile_rows, LANES), in_map),
                pl.BlockSpec((tile_rows, LANES), in_map),
            ],
            out_specs=pl.BlockSpec((SUBLANES, LANES), lambda c, i: (c, 0)),
        ),
        compiler_params=pltpu.CompilerParams(
            dimension_semantics=("parallel", "arbitrary"),
            vmem_limit_bytes=32 * 1024 * 1024),
        cost_estimate=pl.CostEstimate(
            flops=8 * n, transcendentals=n, bytes_accessed=int(bytes_accessed)),
    )(p2d, t2d)

    total = jnp.sum(partials) + tail_sum
    return (-15.0 * total / jnp.float32(n)).astype(jnp.float32)


def _reference(y_predict, y_true, gamma=2):
    p = y_predict.astype(jnp.float32)
    t = y_true.astype(jnp.float32)
    loss = jnp.where(t == 0.0, -15.0 * p * p, 15.0 * _pow(p - 1.0, gamma) * jnp.log(p))
    return -jnp.sum(loss) / p.size


if __name__ == "__main__":
    root = jax.random.PRNGKey(0)
    keys = jax.random.split(root, 4)

    def check(shape, gamma, key, max_tile_rows=None):
        k1, k2 = jax.random.split(key)
        # y_predict: probabilities in (0,1) so log() is finite; y_true: binary.
        y_predict = jax.random.uniform(k1, shape, jnp.float32, minval=0.01, maxval=0.99)
        y_true = (jax.random.uniform(k2, shape, jnp.float32) > 0.5).astype(jnp.float32)
        out = jax.block_until_ready(
            focal_log_loss(y_predict, y_true, gamma=gamma, max_tile_rows=max_tile_rows))
        ref = jax.block_until_ready(_reference(y_predict, y_true, gamma=gamma))
        assert jnp.allclose(out, ref, rtol=1e-5, atol=1e-4), (shape, gamma, out, ref)
        return out

    # Primary small NCHW example: single full block, fast unmasked path.
    check((2, 4, 16, 16), gamma=2, key=keys[0])
    # Partial last block: exercises the gated row-granular tail mask.
    check((2, 3, 24, 24), gamma=2, key=keys[1])
    # Lane tail (n % 128 != 0) + multi-step grid (forced small tile) + edge mask,
    # with an odd-integer gamma (negative-base power path).
    check((1, 1, 40, 100), gamma=3, key=keys[2], max_tile_rows=8)
    # Tiny input: pure-XLA tail path (no kernel launch).
    check((1, 1, 4, 20), gamma=2, key=keys[3])
    print("KERNEL_OK")
</pallas_src>

<mosaic_0001>
module attributes {stable_mosaic.version = 11 : i64} {
  func.func @_focal_kernel(%arg0: i32, %arg1: i32, %arg2: memref<16x128xf32, #tpu.memory_space<vmem>>, %arg3: memref<16x128xf32, #tpu.memory_space<vmem>>, %arg4: memref<8x128xf32, #tpu.memory_space<vmem>>) attributes {dimension_semantics = [#tpu.dimension_semantics<parallel>, #tpu.dimension_semantics<arbitrary>], iteration_bounds = array<i64: 1, 1>, scalar_prefetch = 0 : i64, scratch_operands = 0 : i64, tpu.core_type = #tpu.core_type<tc>, window_params = [{transform_indices = @transform_0, window_bounds = array<i64: 16, 128>}, {transform_indices = @transform_1, window_bounds = array<i64: 16, 128>}, {transform_indices = @transform_2, window_bounds = array<i64: 8, 128>}]} {
    %c0_i32 = arith.constant 0 : i32
    %0 = arith.cmpi eq, %arg1, %c0_i32 : i32
    %1 = arith.extui %0 : i1 to i32
    %c0_i32_0 = arith.constant 0 : i32
    %2 = arith.cmpi ne, %1, %c0_i32_0 : i32
    scf.if %2 {
      %cst_11 = arith.constant 0.000000e+00 : f32
      %21 = vector.broadcast %cst_11 : f32 to vector<8x128xf32>
      %c0_12 = arith.constant 0 : index
      %c0_13 = arith.constant 0 : index
      %22 = vector.load %arg4[%c0_12, %c0_13] : memref<8x128xf32, #tpu.memory_space<vmem>>, vector<8x128xf32>
      tpu.vector_store %arg4[%c0_12, %c0_13], %21 {strides = array<i32>} : memref<8x128xf32, #tpu.memory_space<vmem>>, vector<8x128xf32>,
    } else {
    }
    %c0 = arith.constant 0 : index
    %c0_1 = arith.constant 0 : index
    %3 = vector.load %arg2[%c0, %c0_1] : memref<16x128xf32, #tpu.memory_space<vmem>>, vector<16x128xf32>
    %c0_2 = arith.constant 0 : index
    %c0_3 = arith.constant 0 : index
    %4 = vector.load %arg3[%c0_2, %c0_3] : memref<16x128xf32, #tpu.memory_space<vmem>>, vector<16x128xf32>
    %cst = arith.constant 0.000000e+00 : f32
    %5 = vector.broadcast %cst : f32 to vector<16x128xf32>
    %6 = arith.cmpf oeq, %4, %5 : vector<16x128xf32>
    %7 = arith.mulf %3, %3 : vector<16x128xf32>
    %cst_4 = arith.constant 0.000000e+00 : f32
    %8 = vector.broadcast %cst_4 : f32 to vector<16x128xf32>
    %9 = arith.subf %8, %7 : vector<16x128xf32>
    %cst_5 = arith.constant 1.000000e+00 : f32
    %10 = vector.broadcast %cst_5 : f32 to vector<16x128xf32>
    %11 = arith.subf %3, %10 : vector<16x128xf32>
    %12 = arith.mulf %11, %11 : vector<16x128xf32>
    %13 = math.log %3 : vector<16x128xf32>
    %14 = arith.mulf %12, %13 : vector<16x128xf32>
    %15 = arith.select %6, %9, %14 : vector<16x128xi1>, vector<16x128xf32>
    %c0_6 = arith.constant 0 : index
    %c0_7 = arith.constant 0 : index
    %16 = vector.load %arg4[%c0_6, %c0_7] : memref<8x128xf32, #tpu.memory_space<vmem>>, vector<8x128xf32>
    %17 = vector.shape_cast %15 : vector<16x128xf32> to vector<2x8x128xf32>
    %cst_8 = arith.constant dense<0.000000e+00> : vector<8x128xf32>
    %18 = vector.multi_reduction <add>, %17, %cst_8 [0] : vector<2x8x128xf32> to vector<8x128xf32>
    %19 = arith.addf %16, %18 : vector<8x128xf32>
    %c0_9 = arith.constant 0 : index
    %c0_10 = arith.constant 0 : index
    %20 = vector.load %arg4[%c0_9, %c0_10] : memref<8x128xf32, #tpu.memory_space<vmem>>, vector<8x128xf32>
    tpu.vector_store %arg4[%c0_9, %c0_10], %19 {strides = array<i32>} : memref<8x128xf32, #tpu.memory_space<vmem>>, vector<8x128xf32>,
    return
  }
  func.func @transform_0(%arg0: i32, %arg1: i32) -> (i32, i32) {
    %c0_i32 = arith.constant 0 : i32
    %0 = arith.muli %arg0, %c0_i32 : i32
    %1 = arith.addi %0, %arg1 : i32
    %c0_i32_0 = arith.constant 0 : i32
    %c0_i32_1 = arith.constant 0 : i32
    return %1, %c0_i32_0 : i32, i32
  }
  func.func @transform_1(%arg0: i32, %arg1: i32) -> (i32, i32) {
    %c0_i32 = arith.constant 0 : i32
    %0 = arith.muli %arg0, %c0_i32 : i32
    %1 = arith.addi %0, %arg1 : i32
    %c0_i32_0 = arith.constant 0 : i32
    %c0_i32_1 = arith.constant 0 : i32
    return %1, %c0_i32_0 : i32, i32
  }
  func.func @transform_2(%arg0: i32, %arg1: i32) -> (i32, i32) {
    %c0_i32 = arith.constant 0 : i32
    %c0_i32_0 = arith.constant 0 : i32
    return %arg0, %c0_i32 : i32, i32
  }
}

</mosaic_0001>

<bundles_post_ra>
// kernel: tpu_custom_call.1
= control target key start
LH: loop header
LB: loop body
LE: loop exit
PB: predicated region body
PF: predicated region fallthrough
CT: control target
= control target key end

     0   :  { %7 = vsyncpa [#allocation3], 0  ;;  %s194_s0 = inlined_call_operand.hbm [shape: f32[16,128], index: 0, kind: input, shape index: {}]   ;;  %s195_s1 = inlined_call_operand.hbm [shape: f32[16,128], index: 1, kind: input, shape index: {}]   ;;  %s196_s2 = inlined_call_operand.hbm [shape: f32[8,128], index: 2, kind: output, shape index: {}]  }
   0x1   :  { %8 = vsyncpa [#allocation6], 0 }
   0x2   :  { %9 = vsyncpa [#allocation4], 0  ;;  %s165_s9 = smov [#allocation2]  }
   0x3   :  { %s15_s10 = sshll.u32 %s165_s9, 4  ;;  %s16_s10 = int_to_ptr.vmem [resolvable:$true] %s15_s10 }
   0x4   :  { %s107_s11 = scalar_lea.vmem %s16_s10, 256  ;;  %p112_p1 = scmp.lt.s32.totalorder %s16_s10, %s16_s10 }
   0x5   :  { %p108_p0 = scmp.ne.s32.totalorder %s16_s10, %s107_s11  ;;  %p113_p2 = scmp.lt.s32.totalorder %s107_s11, %s107_s11 }
   0x7   :  { %p114_p3 = por %p113_p2, %p112_p1 }
   0x9   :  { %p115_p4 = pnand %p114_p3, %p108_p0 }
   0xb   :  { %118 = shalt.err (!%p115_p4)
}
   0xc   :  { %s166_s12 = smov 128   ;;  %s167_s13 = smov 8  }
   0xd   :  { %21 = dma.hbm_to_vmem [thread:$0]  %s194_s0, 256, %s16_s10, [#allocation3], %s166_s12, %s166_s12, %s167_s13  }
   0xe   :  { %s168_s16 = smov [#allocation5]  }
   0xf   :  { %s27_s17 = sshll.u32 %s168_s16, 4  ;;  %s28_s17 = int_to_ptr.vmem [resolvable:$true] %s27_s17 }
  0x10   :  { %s127_s18 = scalar_lea.vmem %s28_s17, 256  ;;  %p132_p6 = scmp.lt.s32.totalorder %s28_s17, %s28_s17 }
  0x11   :  { %p128_p5 = scmp.ne.s32.totalorder %s28_s17, %s127_s18  ;;  %p133_p7 = scmp.lt.s32.totalorder %s127_s18, %s127_s18 }
  0x13   :  { %p134_p8 = por %p133_p7, %p132_p6 }
  0x15   :  { %p135_p9 = pnand %p134_p8, %p128_p5 }
  0x17   :  { %138 = shalt.err (!%p135_p9)
}
  0x18   :  { %33 = dma.hbm_to_vmem [thread:$0]  %s195_s1, 256, %s28_s17, [#allocation6], %s166_s12, %s166_s12, %s167_s13  }
  0x19   :  { %159 = dma.done.wait [#allocation3], 256  }
  0x1a   :  { %160 = vsyncadd [#allocation3], 4294967040 }
  0x1b   :  { %161 = dma.done.wait [#allocation6], 256  }
  0x1c   :  { %162 = vsyncadd [#allocation6], 4294967040  ;;  %v45_v0 = vld [vmem:[#allocation2] sm:$0xff]  ;;  %v46_v1 = vld [vmem:[#allocation2 + $0x8] sm:$0xff]  ;;  %s169_s0 = smov [#allocation7]  }
  0x1d   :  { %95 = vlog2.f32 %v45_v0  ;;  %v87_v2 = vadd.f32 -1.0, %v45_v0  ;;  %v88_v3 = vadd.f32 -1.0, %v46_v1  ;;  %v51_v4 = vmul.f32 %v45_v0, %v45_v0  ;;  %v47_v6 = vld [vmem:[#allocation5] sm:$0xff]  ;;  %v48_v9 = vld [vmem:[#allocation5 + $0x8] sm:$0xff]  ;;  %s77_s1 = sshll.u32 %s169_s0, 4  ;;  %s78_s1 = int_to_ptr.vmem [resolvable:$true] %s77_s1 }
  0x1e   :  { %97 = vlog2.f32 %v46_v1  ;;  %v52_v5 = vmul.f32 %v46_v1, %v46_v1  ;;  %vm49_vm0 = vcmp.eq.f32.partialorder %v47_v6, 0.0  ;;  %vm50_vm1 = vcmp.eq.f32.partialorder %v48_v9, 0.0  ;;  %s139_s21 = scalar_lea.vmem %s78_s1, 128  ;;  %p144_p11 = scmp.lt.s32.totalorder %s78_s1, %s78_s1 }
  0x1f   :  { %v57_v7 = vmul.f32 %v87_v2, %v87_v2  ;;  %v58_v10 = vmul.f32 %v88_v3, %v88_v3  ;;  %v53_v12 = vsub.f32 0.0, %v51_v4  ;;  %p140_p10 = scmp.ne.s32.totalorder %s78_s1, %s139_s21  ;;  %p145_p12 = scmp.lt.s32.totalorder %s139_s21, %s139_s21 }
  0x20   :  { %v54_v14 = vsub.f32 0.0, %v52_v5 }
  0x21   :  { %p146_p13 = por %p145_p12, %p144_p11 }
  0x23   :  { %p147_p0 = pnand %p146_p13, %p140_p10 }
  0x2a   :  { %v96_v8 = vpop.eup %95 }
  0x2b   :  { %v98_v11 = vpop.eup %97  ;;  %v60_v13 = vmul.f32 0.6931472, %v96_v8 }
  0x2c   :  { %v62_v15 = vmul.f32 0.6931472, %v98_v11 }
  0x2d   :  { %v63_v16 = vmul.f32 %v60_v13, %v57_v7 }
  0x2e   :  { %v64_v17 = vmul.f32 %v62_v15, %v58_v10 }
  0x2f   :  { %v65_v18 = vsel %vm49_vm0, %v53_v12, %v63_v16 }
  0x30   :  { %v66_v19 = vsel %vm50_vm1, %v54_v14, %v64_v17 }
  0x31   :  { %v68_v20 = vadd.f32 %v66_v19, %v65_v18 }
  0x33   :  { %70 = vst [vmem:[#allocation7] sm:$0xff] %v68_v20 }
  0x34   :  { %150 = shalt.err (!%p147_p0)
}
  0x35   :  { %80 = dma.vmem_to_hbm [thread:$0]  %s78_s1, 128, %s196_s2, [#allocation4]  }
  0x36   :  { %163 = dma.done.wait [#allocation4], 128  }
  0x37   :  { %164 = vsyncadd [#allocation4], 4294967168 }
  0x38   :  { %84 = vsyncpa [#allocation3], 1 }
  0x39   :  { %85 = vsyncpa [#allocation6], 1 }
  0x3a   :  { %86 = vsyncpa [#allocation4], 1 }

</bundles_post_ra>
